<compile_context>
chip_gen: v5e
topology: v5e:2x2
jax: 0.10.0
libtpu: 0.0.40
codegen_flags: <defaults>
</compile_context>

<pallas_src>
import math

import jax
import jax.numpy as jnp
from jax.experimental import pallas as pl
from jax.experimental.pallas import tpu as pltpu

# --- module hyper-parameters (defaults from L0Embedding.__init__) -----------
LIMIT_A = -0.1
LIMIT_B = 1.1
TEMPERATURE = 2.0 / 3.0
DROPRATE_INIT = 0.5
LOGA_INIT_STD = 0.01
EPSILON = 1e-6

# V-chunk size (rows) for the one-hot path: keeps the materialized one-hot at
# (token_tile, 4096) and the per-step VPU burst bounded for large vocabularies.
_V_CHUNK_ROWS = 4096


def _round_up(x: int, m: int) -> int:
    return ((x + m - 1) // m) * m


def _pad_last(x, d_pad: int):
    d = x.shape[-1]
    if d == d_pad:
        return x
    return jnp.pad(x, ((0, 0), (0, d_pad - d)))


def _hard_concrete_gate(qz_loga):
    """Deterministic (eval-mode) hard-concrete gate, computed in the input dtype."""
    pi = jax.nn.sigmoid(qz_loga)
    return jnp.clip(pi * (LIMIT_B - LIMIT_A) + LIMIT_A, 0.0, 1.0)


def _tpu_generation_params():
    """Generation-aware sizing: (token_tile, max_resident_table_bytes, vmem_limit)."""
    vmem_bytes = None
    try:
        vmem_bytes = int(pltpu.get_tpu_info().vmem_capacity_bytes)
    except Exception:
        vmem_bytes = None
    try:
        kind = jax.devices()[0].device_kind.lower()
    except Exception:
        kind = ""
    # v5e MXU is 128x128 -> 128-row token tiles already fill the M dim;
    # v6e/v7x MXUs are 256-wide -> use 256-row tiles to halve grid steps.
    token_tile = 128 if "v5" in kind else 256
    if vmem_bytes is None:
        vmem_bytes = 128 * 1024 * 1024 if ("v5" in kind or "v6" in kind) else 64 * 1024 * 1024
    if vmem_bytes >= 128 * 1024 * 1024:          # v5e / v6e: 128 MiB VMEM per TC
        max_table_bytes = 40 * 1024 * 1024
        vmem_limit = 96 * 1024 * 1024
    else:                                         # v7x: 64 MiB per TC (2 TCs/chip)
        max_table_bytes = 20 * 1024 * 1024
        vmem_limit = 48 * 1024 * 1024
    return token_tile, max_table_bytes, vmem_limit


# ---------------------------------------------------------------------------
# Path 1: small/medium vocabulary -- pre-gated table (resident or V-chunked),
# one-hot-matmul gather on the MXU, one tile of tokens per outer grid step.
# ---------------------------------------------------------------------------
def _onehot_gather_kernel(idx_ref, table_ref, out_ref, acc_ref):
    """idx_ref: (TT,1) int32; table_ref: (Vc,Dp) pre-gated chunk; out/acc: (TT,Dp)."""
    c = pl.program_id(1)

    @pl.when(c == 0)
    def _():
        acc_ref[...] = jnp.zeros_like(acc_ref)

    ids = idx_ref[...]                                   # (TT, 1)
    tt = ids.shape[0]
    vc = table_ref.shape[0]
    # onehot[t, v] = (global_v == ids[t]); built in the table dtype so a bf16
    # table takes the native bf16 MXU path (0/1 is exact in bf16).
    col = jax.lax.broadcasted_iota(jnp.int32, (tt, vc), 1) + c * vc
    onehot = (col == ids).astype(table_ref.dtype)        # (TT, Vc)
    acc_ref[...] += jnp.dot(onehot, table_ref[...],
                            preferred_element_type=jnp.float32)

    @pl.when(c == pl.num_programs(1) - 1)
    def _():
        out_ref[...] = acc_ref[...].astype(out_ref.dtype)


def _l0_embedding_onehot(indices, gated_table, d, out_dtype, *,
                         token_tile, v_chunk_rows, vmem_limit):
    n = indices.shape[0]
    v, d_pad = gated_table.shape

    tile = min(_round_up(token_tile, 8), _round_up(n, 8))
    n_pad = _round_up(n, tile)
    idx = jnp.zeros((n_pad, 1), jnp.int32).at[:n, 0].set(indices.astype(jnp.int32))

    v_chunk = min(_round_up(v, 8), _round_up(v_chunk_rows, 8))
    v_pad = _round_up(v, v_chunk)
    if v_pad != v:
        gated_table = jnp.pad(gated_table, ((0, v_pad - v), (0, 0)))
    n_chunks = v_pad // v_chunk

    if n_chunks == 1:
        # Constant index_map -> the table is DMA'd once; Buffered(1) drops the
        # (useless) second pipeline buffer and halves the dominant VMEM cost.
        table_spec = pl.BlockSpec((v_chunk, d_pad), lambda i, c: (0, 0),
                                  pipeline_mode=pl.Buffered(1))
    else:
        # Streamed V-chunks along the inner "arbitrary" axis (default 2 buffers
        # so the next chunk's DMA overlaps the current chunk's matmul).
        table_spec = pl.BlockSpec((v_chunk, d_pad), lambda i, c: (c, 0))

    out = pl.pallas_call(
        _onehot_gather_kernel,
        out_shape=jax.ShapeDtypeStruct((n_pad, d_pad), out_dtype),
        grid_spec=pltpu.PrefetchScalarGridSpec(
            num_scalar_prefetch=0,
            grid=(n_pad // tile, n_chunks),
            in_specs=[
                pl.BlockSpec((tile, 1), lambda i, c: (i, 0)),   # token-index tile
                table_spec,
            ],
            out_specs=pl.BlockSpec((tile, d_pad), lambda i, c: (i, 0)),
            scratch_shapes=[pltpu.VMEM((tile, d_pad), jnp.float32)],
        ),
        compiler_params=pltpu.CompilerParams(
            dimension_semantics=("parallel", "arbitrary"),
            vmem_limit_bytes=vmem_limit,
        ),
    )(idx, gated_table)
    return out[:n, :d]


# ---------------------------------------------------------------------------
# Path 2: large vocabulary -- packed (V, 2*Dp) table stays in HBM; scalar-
# prefetched indices drive per-row DMAs; R rows per grid step, double-buffered.
# ---------------------------------------------------------------------------
def _row_gather_kernel(idx_ref, tbl_hbm, out_ref, buf, sem):
    """idx_ref: SMEM (Npad,) int32; tbl_hbm: HBM (V, 2*Dp); out_ref: (R, Dp);
    buf: VMEM (2, R, 2*Dp) double buffer; sem: DMA semaphores (2, R)."""
    b = pl.program_id(0)
    nb = pl.num_programs(0)
    rows = buf.shape[1]
    two_d = buf.shape[2]
    d_pad = two_d // 2

    def fetch(batch, slot):
        for r in range(rows):                             # static unroll: R DMAs
            row = idx_ref[batch * rows + r]
            pltpu.make_async_copy(
                tbl_hbm.at[pl.ds(row, 1)],                # (1, 2*Dp) gathered row
                buf.at[slot, pl.ds(r, 1)],
                sem.at[slot, r],
            ).start()

    @pl.when(b == 0)
    def _():
        fetch(0, 0)

    slot = b % 2

    @pl.when(b + 1 < nb)                                   # prefetch next batch
    def _():
        fetch(b + 1, 1 - slot)

    for r in range(rows):                                  # wait current batch
        pltpu.make_async_copy(
            tbl_hbm.at[pl.ds(0, 1)],
            buf.at[slot, pl.ds(r, 1)],
            sem.at[slot, r],
        ).wait()

    rows_data = buf[slot]                                  # (R, 2*Dp)
    emb = rows_data[:, :d_pad].astype(jnp.float32)
    loga = rows_data[:, d_pad:].astype(jnp.float32)        # gate always in f32
    z = jnp.clip(jax.nn.sigmoid(loga) * (LIMIT_B - LIMIT_A) + LIMIT_A, 0.0, 1.0)
    out_ref[...] = (emb * z).astype(out_ref.dtype)


def _l0_embedding_row_gather(indices, packed_table, d, out_dtype, *,
                             rows_per_step, vmem_limit):
    v, two_d = packed_table.shape
    d_pad = two_d // 2
    n = indices.shape[0]
    r = _round_up(max(rows_per_step, 8), 8)
    n_pad = _round_up(max(n, r), r)
    idx = jnp.zeros((n_pad,), jnp.int32).at[:n].set(indices.astype(jnp.int32))

    out = pl.pallas_call(
        _row_gather_kernel,
        out_shape=jax.ShapeDtypeStruct((n_pad, d_pad), out_dtype),
        grid_spec=pltpu.PrefetchScalarGridSpec(
            num_scalar_prefetch=1,            # indices -> SMEM (read in-kernel)
            grid=(n_pad // r,),
            in_specs=[pl.BlockSpec(memory_space=pl.ANY)],   # packed table in HBM
            out_specs=pl.BlockSpec((r, d_pad), lambda b, idx_ref: (b, 0)),
            scratch_shapes=[
                pltpu.VMEM((2, r, two_d), packed_table.dtype),
                pltpu.SemaphoreType.DMA((2, r)),
            ],
        ),
        compiler_params=pltpu.CompilerParams(
            # cross-step double-buffer carry -> must stay sequential on one core
            dimension_semantics=("arbitrary",),
            vmem_limit_bytes=vmem_limit,
        ),
    )(idx, packed_table)
    return out[:n, :d]


def l0_embedding_forward(indices, emb_weight, qz_loga_weight, *,
                         use_gather=None, compute_dtype=None, token_tile=None,
                         rows_per_step=8, v_chunk_rows=None, packed_tables=None):
    """Eval-mode L0Embedding forward.

    indices: (N,) integer indices in [0, V); emb_weight / qz_loga_weight: (V, D).
    compute_dtype: optional (e.g. jnp.bfloat16) dtype for the pre-gated table on
      the one-hot path (f32 gate + f32 MXU accumulation are kept).
    packed_tables: optional pre-packed (V, 2*Dpad) table for the large-V path.
    """
    v, d = emb_weight.shape
    out_dtype = emb_weight.dtype
    gen_tile, max_table_bytes, vmem_limit = _tpu_generation_params()
    if token_tile is None:
        token_tile = gen_tile
    if v_chunk_rows is None:
        v_chunk_rows = _V_CHUNK_ROWS

    d_pad = _round_up(d, 128)
    table_dtype = jnp.dtype(compute_dtype) if compute_dtype is not None else jnp.dtype(out_dtype)
    table_bytes = v * d_pad * table_dtype.itemsize
    if use_gather is None:
        use_gather = table_bytes > max_table_bytes

    if use_gather:
        if packed_tables is None:
            # TODO(synk): in production pre-pack once and reuse across calls
            #             (this concat touches O(V*D) elements per call).
            packed_tables = jnp.concatenate(
                [_pad_last(emb_weight, d_pad), _pad_last(qz_loga_weight, d_pad)],
                axis=1)
        return _l0_embedding_row_gather(indices, packed_tables, d, out_dtype,
                                        rows_per_step=rows_per_step,
                                        vmem_limit=vmem_limit)

    # Pre-gate ONCE (gather-then-gate == gate-then-gather since z depends only on
    # the gathered row).  Gate in f32 for full fidelity, then cast once.
    z = _hard_concrete_gate(qz_loga_weight.astype(jnp.float32))
    gated = (emb_weight.astype(jnp.float32) * z).astype(table_dtype)
    gated = _pad_last(gated, d_pad)
    return _l0_embedding_onehot(indices, gated, d, out_dtype,
                                token_tile=token_tile,
                                v_chunk_rows=v_chunk_rows,
                                vmem_limit=vmem_limit)


if __name__ == "__main__":
    num_embeddings = 64
    embedding_dim = 128
    n_tokens = 16

    key = jax.random.PRNGKey(0)
    k_idx, k_emb, k_loga = jax.random.split(key, 3)

    # Parameters: qz_loga matches the module's init (Normal(log(1-p)-log(p), std),
    # p=0.5); emb uses random values (instead of fill_(1)) so a wrong gathered
    # row is actually detectable by the checks below.
    emb_weight = jax.random.normal(k_emb, (num_embeddings, embedding_dim), jnp.float32)
    loga_mean = math.log(1.0 - DROPRATE_INIT) - math.log(DROPRATE_INIT)  # = 0.0
    qz_loga_weight = loga_mean + LOGA_INIT_STD * jax.random.normal(
        k_loga, (num_embeddings, embedding_dim), dtype=jnp.float32)

    indices = jax.random.randint(
        k_idx, (n_tokens,), 0, num_embeddings, dtype=jnp.int32)

    # Pure-JAX reference of the eval-mode forward pass.
    ref = emb_weight[indices] * _hard_concrete_gate(qz_loga_weight[indices])

    # Path 1a: resident pre-gated table (single V chunk, Buffered(1)) + MXU gather.
    out_onehot = jax.block_until_ready(
        l0_embedding_forward(indices, emb_weight, qz_loga_weight))
    assert out_onehot.shape == (n_tokens, embedding_dim)
    assert out_onehot.dtype == jnp.float32
    assert jnp.allclose(out_onehot, ref, atol=1e-5, rtol=1e-5), "onehot path mismatch"

    # Path 1b: same kernel with V chunking forced (2 chunks of 32 rows) to
    # exercise the accumulate-over-chunks path on tiny shapes.
    out_chunked = jax.block_until_ready(
        l0_embedding_forward(indices, emb_weight, qz_loga_weight, v_chunk_rows=32))
    assert jnp.allclose(out_chunked, ref, atol=1e-5, rtol=1e-5), "chunked onehot mismatch"

    # Path 1c: bf16 compute-dtype table (f32 gate + f32 MXU accumulation).
    out_bf16 = jax.block_until_ready(
        l0_embedding_forward(indices, emb_weight, qz_loga_weight,
                             compute_dtype=jnp.bfloat16))
    assert jnp.allclose(out_bf16, ref, atol=2e-2, rtol=1e-2), "bf16 onehot mismatch"

    # Path 2: HBM packed table + scalar-prefetch manual-DMA row gather
    # (the large-V path; 8 rows per step, double-buffered), forced here.
    out_gather = jax.block_until_ready(
        l0_embedding_forward(indices, emb_weight, qz_loga_weight, use_gather=True))
    assert out_gather.shape == (n_tokens, embedding_dim)
    assert jnp.allclose(out_gather, ref, atol=1e-5, rtol=1e-5), "gather path mismatch"

    print("KERNEL_OK")
</pallas_src>

<mosaic_0001>
module attributes {stable_mosaic.version = 11 : i64} {
  func.func @_onehot_gather_kernel(%arg0: i32, %arg1: i32, %arg2: memref<16x1xi32, #tpu.memory_space<vmem>>, %arg3: memref<64x128xf32, #tpu.memory_space<vmem>>, %arg4: memref<16x128xf32, #tpu.memory_space<vmem>>, %arg5: memref<16x128xf32, #tpu.memory_space<vmem>>) attributes {dimension_semantics = [#tpu.dimension_semantics<parallel>, #tpu.dimension_semantics<arbitrary>], iteration_bounds = array<i64: 1, 1>, scalar_prefetch = 0 : i64, scratch_operands = 1 : i64, tpu.core_type = #tpu.core_type<tc>, window_params = [{transform_indices = @transform_0, window_bounds = array<i64: 16, 1>}, {pipeline_mode = #tpu.pipeline_mode<synchronous>, transform_indices = @transform_1, window_bounds = array<i64: 64, 128>}, {transform_indices = @transform_2, window_bounds = array<i64: 16, 128>}]} {
    %c0_i32 = arith.constant 0 : i32
    %0 = arith.cmpi eq, %arg1, %c0_i32 : i32
    %1 = arith.extui %0 : i1 to i32
    %c0_i32_0 = arith.constant 0 : i32
    %2 = arith.cmpi ne, %1, %c0_i32_0 : i32
    scf.if %2 {
      %cst_10 = arith.constant 0.000000e+00 : f32
      %20 = vector.broadcast %cst_10 : f32 to vector<16x128xf32>
      %c0_11 = arith.constant 0 : index
      %c0_12 = arith.constant 0 : index
      %21 = vector.load %arg5[%c0_11, %c0_12] : memref<16x128xf32, #tpu.memory_space<vmem>>, vector<16x128xf32>
      tpu.vector_store %arg5[%c0_11, %c0_12], %20 {strides = array<i32>} : memref<16x128xf32, #tpu.memory_space<vmem>>, vector<16x128xf32>,
    } else {
    }
    %c0 = arith.constant 0 : index
    %c0_1 = arith.constant 0 : index
    %3 = vector.load %arg2[%c0, %c0_1] : memref<16x1xi32, #tpu.memory_space<vmem>>, vector<16x1xi32>
    %4 = tpu.iota {dimensions = array<i32: 1>} : vector<16x64xi32>
    %c64_i32 = arith.constant 64 : i32
    %5 = arith.muli %arg1, %c64_i32 : i32
    %6 = vector.broadcast %5 : i32 to vector<16x64xi32>
    %7 = arith.addi %4, %6 : vector<16x64xi32>
    %8 = vector.broadcast %3 : vector<16x1xi32> to vector<16x64xi32>
    %9 = arith.cmpi eq, %7, %8 : vector<16x64xi32>
    %10 = arith.extui %9 : vector<16x64xi1> to vector<16x64xi32>
    %11 = arith.sitofp %10 : vector<16x64xi32> to vector<16x64xf32>
    %c0_2 = arith.constant 0 : index
    %c0_3 = arith.constant 0 : index
    %12 = vector.load %arg5[%c0_2, %c0_3] : memref<16x128xf32, #tpu.memory_space<vmem>>, vector<16x128xf32>
    %c0_4 = arith.constant 0 : index
    %c0_5 = arith.constant 0 : index
    %13 = vector.load %arg3[%c0_4, %c0_5] : memref<64x128xf32, #tpu.memory_space<vmem>>, vector<64x128xf32>
    %cst = arith.constant dense<0.000000e+00> : vector<16x128xf32>
    %14 = tpu.matmul %11, %13, %cst {dimension_numbers = #tpu.dot_dimension_numbers<[1], [0], [0], [1], [0, 0, 1, 1], [], []>} : vector<16x64xf32>, vector<64x128xf32>, vector<16x128xf32> -> vector<16x128xf32>
    %15 = arith.addf %12, %14 : vector<16x128xf32>
    %c0_6 = arith.constant 0 : index
    %c0_7 = arith.constant 0 : index
    %16 = vector.load %arg5[%c0_6, %c0_7] : memref<16x128xf32, #tpu.memory_space<vmem>>, vector<16x128xf32>
    tpu.vector_store %arg5[%c0_6, %c0_7], %15 {strides = array<i32>} : memref<16x128xf32, #tpu.memory_space<vmem>>, vector<16x128xf32>,
    %c0_i32_8 = arith.constant 0 : i32
    %17 = arith.cmpi eq, %arg1, %c0_i32_8 : i32
    %18 = arith.extui %17 : i1 to i32
    %c0_i32_9 = arith.constant 0 : i32
    %19 = arith.cmpi ne, %18, %c0_i32_9 : i32
    scf.if %19 {
      %c0_10 = arith.constant 0 : index
      %c0_11 = arith.constant 0 : index
      %20 = vector.load %arg5[%c0_10, %c0_11] : memref<16x128xf32, #tpu.memory_space<vmem>>, vector<16x128xf32>
      %c0_12 = arith.constant 0 : index
      %c0_13 = arith.constant 0 : index
      %21 = vector.load %arg4[%c0_12, %c0_13] : memref<16x128xf32, #tpu.memory_space<vmem>>, vector<16x128xf32>
      tpu.vector_store %arg4[%c0_12, %c0_13], %20 {strides = array<i32>} : memref<16x128xf32, #tpu.memory_space<vmem>>, vector<16x128xf32>,
    } else {
    }
    return
  }
  func.func @transform_0(%arg0: i32, %arg1: i32) -> (i32, i32) {
    %c0_i32 = arith.constant 0 : i32
    %c0_i32_0 = arith.constant 0 : i32
    return %arg0, %c0_i32 : i32, i32
  }
  func.func @transform_1(%arg0: i32, %arg1: i32) -> (i32, i32) {
    %c0_i32 = arith.constant 0 : i32
    %c0_i32_0 = arith.constant 0 : i32
    %c0_i32_1 = arith.constant 0 : i32
    return %c0_i32, %c0_i32_0 : i32, i32
  }
  func.func @transform_2(%arg0: i32, %arg1: i32) -> (i32, i32) {
    %c0_i32 = arith.constant 0 : i32
    %c0_i32_0 = arith.constant 0 : i32
    return %arg0, %c0_i32 : i32, i32
  }
}

</mosaic_0001>

<bundles_post_ra>
// kernel: tpu_custom_call.1
= control target key start
LH: loop header
LB: loop body
LE: loop exit
PB: predicated region body
PF: predicated region fallthrough
CT: control target
= control target key end

     0   :  { %7 = vsyncpa [#allocation4], 0  ;;  %s233_s0 = inlined_call_operand.vmem [shape: s32[16,1], index: 0, kind: input, shape index: {}]   ;;  %s234_s1 = inlined_call_operand.hbm [shape: f32[64,128], index: 1, kind: input, shape index: {}]   ;;  %s235_s2 = inlined_call_operand.hbm [shape: f32[16,128], index: 2, kind: output, shape index: {}]  }
   0x1   :  { %8 = vsyncpa [#allocation5], 0  ;;  %s15_s11 = sshll.u32 %s234_s1, 4  ;;  %s194_s12 = smov [#allocation3]   ;;  %s16_s11 = int_to_ptr.hbm [resolvable:$true] %s15_s11 }
   0x2   :  { %s17_s13 = sshll.u32 %s194_s12, 4  ;;  %s195_s14 = smov 128   ;;  %s18_s13 = int_to_ptr.vmem [resolvable:$true] %s17_s13 }
   0x3   :  { %s196_s15 = smov 8  }
   0x4   :  { %23 = dma.hbm_to_vmem [thread:$0]  %s16_s11, 1024, %s18_s13, [#allocation4], %s195_s14, %s195_s14, %s196_s15  }
   0x5   :  { %190 = dma.done.wait [#allocation4], 1024  }
   0x6   :  { %191 = vsyncadd [#allocation4], 4294966272  ;;  %v197_v0 = vmov 0   ;;  %v34_v1 = vld [vmem:[%s233_s0] sm:$0xff]  ;;  %v62_v2 = vld [vmem:[#allocation3 + $0x38] sm:$0xff]  ;;  %v36_v11 = vlaneseq  ;;  %vm63_vm0 = vcmask 523264  }
   0x7   :  { %141 = vset.pattern.permute.xlu0 %v197_v0  ;;  %78 = vmatpush.msra.mxu0 %v62_v2  ;;  %v61_v3 = vld [vmem:[#allocation3 + $0x30] sm:$0xff]  ;;  %v60_v4 = vld [vmem:[#allocation3 + $0x28] sm:$0xff]  ;;  %v59_v5 = vld [vmem:[#allocation3 + $0x20] sm:$0xff]  ;;  %v198_v14 = vmov 0.0   ;;  %s110_s22 = sshll.u32 %s235_s2, 4  ;;  %s111_s22 = int_to_ptr.hbm [resolvable:$true] %s110_s22 }
   0x8   :  { %42 = vperm.xlu0 %141, %v34_v1   ;;  %127 = vmatpush.msra.mxu1 %v62_v2  ;;  %v35_v6 = vld [vmem:[%s233_s0 + $0x8] sm:$0xff]  ;;  %v58_v7 = vld [vmem:[#allocation3 + $0x18] sm:$0xff]  ;;  %v57_v8 = vld [vmem:[#allocation3 + $0x10] sm:$0xff]  ;;  %v37_v12 = vand.u32 127, %v36_v11  ;;  %s199_s0 = smov [#allocation6]  }
   0x9   :  { %79 = vmatpush.msra.mxu0 %v61_v3  ;;  %v56_v9 = vld [vmem:[#allocation3 + $0x8] sm:$0xff]  ;;  %v55_v10 = vld [vmem:[#allocation3] sm:$0xff]  ;;  %s108_s19 = sshll.u32 %s199_s0, 4  ;;  %s109_s19 = int_to_ptr.vmem [resolvable:$true] %s108_s19 }
   0xa   :  { %128 = vmatpush.msra.mxu1 %v61_v3 }
   0xb   :  { %80 = vmatpush.msra.mxu0 %v60_v4 }
   0xc   :  { %129 = vmatpush.msra.mxu1 %v60_v4 }
   0xd   :  { %81 = vmatpush.msra.mxu0 %v59_v5 }
   0xe   :  { %130 = vmatpush.msra.mxu1 %v59_v5 }
   0xf   :  { %82 = vmatpush.msra.mxu0 %v58_v7 }
  0x10   :  { %45 = vperm.xlu0 %141, %v35_v6   ;;  %131 = vmatpush.msra.mxu1 %v58_v7 }
  0x11   :  { %83 = vmatpush.msra.mxu0 %v57_v8 }
  0x12   :  { %132 = vmatpush.msra.mxu1 %v57_v8 }
  0x13   :  { %84 = vmatpush.msra.mxu0 %v56_v9 }
  0x14   :  { %133 = vmatpush.msra.mxu1 %v56_v9 }
  0x15   :  { %85 = vmatpush.msra.mxu0 %v55_v10 }
  0x16   :  { %134 = vmatpush.msra.mxu1 %v55_v10 }
  0x7a   :  { %v43_v13 = vpop.permute.xlu0 %42 }
  0x7b   :  { %vm47_vm1 = vcmp.eq.s32.totalorder %v37_v12, %v43_v13 }
  0x7c   :  { %v123_v15 = vsel %vm47_vm1, 1.0, %v198_v14 }
  0x7d   :  { %125 = vmatmul.msk.f32.vlgmr.msra.gmra.mxu0 %vm63_vm0, %v123_v15 }
  0x82   :  { %v46_v16 = vpop.permute.xlu0 %45 }
  0x83   :  { %vm48_vm2 = vcmp.eq.s32.totalorder %v37_v12, %v46_v16 }
  0x84   :  { %v124_v17 = vsel %vm48_vm2, 1.0, %v198_v14 }
  0x85   :  { %126 = vmatmul.msk.f32.vlgmr.msra.gmra.mxu1 %vm63_vm0, %v124_v17 }
  0xfa   :  { %v87_v18 = vpop.f32.mrf.mxu0 }
  0xfb   :  { %102 = vst [vmem:[#allocation6] sm:$0xff] %v87_v18 }
 0x102   :  { %v90_v19 = vpop.f32.mrf.mxu1 }
 0x103   :  { %103 = vst [vmem:[#allocation6 + $0x8] sm:$0xff] %v90_v19 }
 0x104   :  { %116 = dma.vmem_to_hbm [thread:$0]  %s109_s19, 256, %s111_s22, [#allocation5], %s195_s14, %s195_s14, %s196_s15  }
 0x105   :  { %192 = dma.done.wait [#allocation5], 256  }
 0x106   :  { %193 = vsyncadd [#allocation5], 4294967040 }
 0x107   :  { %121 = vsyncpa [#allocation4], 1 }
 0x108   :  { %122 = vsyncpa [#allocation5], 1 }

</bundles_post_ra>
